<compile_context>
chip_gen: v5e
topology: v5e:2x2
jax: 0.10.0
libtpu: 0.0.40
codegen_flags: <defaults>
</compile_context>

<pallas_src>
import jax
import jax.numpy as jnp
from jax import lax
from jax.experimental import pallas as pl
from jax.experimental.pallas import tpu as pltpu


# ----------------------------- kernels --------------------------------------


def _conv_stats_kernel(x_ref, w_ref, y_ref, s_ref, q_ref):
    """1x1 conv (MXU matmul) + per-tile BN partial statistics.

    x_ref: (4, TM, Cin)  - leading axis is the 2x2-pool parity (2*dh + dw).
    w_ref: (Cin, Cout)   - resident weights.
    y_ref: (4, TM, Cout) - conv output (compute dtype), consumed by pass 2.
    s_ref/q_ref: (1, 1, Cout) f32 partial sum / sum-of-squares of y.
    """
    cout = w_ref.shape[-1]
    s = jnp.zeros((1, cout), jnp.float32)
    q = jnp.zeros((1, cout), jnp.float32)
    for p in range(4):                                   # static, unrolled
        y = jnp.dot(x_ref[p], w_ref[...], preferred_element_type=jnp.float32)
        y_ref[p] = y.astype(y_ref.dtype)
        s = s + jnp.sum(y, axis=0, keepdims=True)
        q = q + jnp.sum(y * y, axis=0, keepdims=True)
    s_ref[...] = s.reshape(1, 1, cout)
    q_ref[...] = q.reshape(1, 1, cout)


def _bn_relu_pool_kernel(y_ref, sc_ref, o_ref):
    """BN scale/shift + ReLU (f32) and 2x2 average pooling via parity sum.

    y_ref: (4, TM, Cout); sc_ref: (2, Cout) rows = [scale, shift];
    o_ref: (TM, Cout) pooled output tile.
    """
    sc = sc_ref[...]
    scale = sc[0:1, :]                                   # (1, Cout)
    shift = sc[1:2, :]
    acc = jnp.zeros(o_ref.shape, jnp.float32)
    for p in range(4):                                   # static, unrolled
        z = y_ref[p].astype(jnp.float32) * scale + shift
        acc = acc + jnp.maximum(z, 0.0)                  # ReLU before pooling
    o_ref[...] = (acc * 0.25).astype(o_ref.dtype)


# ----------------------------- tiling plan ------------------------------------


def _tpu_vmem_capacity_bytes():
    try:
        return int(pltpu.get_tpu_info().vmem_capacity_bytes)
    except Exception:
        return 64 * 1024 * 1024        # conservative default (v7x per-core VMEM)


def _divisors(n):
    ds = []
    i = 1
    while i * i <= n:
        if n % i == 0:
            ds.append(i)
            if i != n // i:
                ds.append(n // i)
        i += 1
    return ds


def _pick_tile_rows(m_rows, tile_cap_rows):
    """Largest TM with TM | m_rows and TM % 8 == 0 (or TM == m_rows) that fits
    the VMEM cap; prefer >=2 tiles, and an even tile count (v7x megacore)
    unless that would shrink the tile by more than 2x."""
    if m_rows % 8 != 0:
        return m_rows                  # full-array block is always legal
    divs = sorted(d for d in _divisors(m_rows) if d % 8 == 0)
    fitting = [d for d in divs if d <= tile_cap_rows]
    if not fitting:
        return divs[0]
    multi = [d for d in fitting if (m_rows // d) >= 2]
    if multi:
        best = max(multi)
        even = [d for d in multi if (m_rows // d) % 2 == 0 and d * 2 >= best]
        return max(even) if even else best
    return max(fitting)


def _plan_tiles(m_rows, cin, cout, itemsize, max_tile_rows):
    cap = _tpu_vmem_capacity_bytes()
    const_bytes = 2 * cin * cout * itemsize + 4 * 1024   # resident weight + params
    # Per-row VMEM need (double-buffered in/out + live f32 intermediates);
    # take the worse of the two passes.
    pass1_row = 2 * 4 * cin * itemsize + 2 * 4 * cout * itemsize + 8 * cout * 4
    pass2_row = 2 * 4 * cout * itemsize + 2 * cout * 4 + 8 * cout * 4
    per_row = max(pass1_row, pass2_row)
    budget = max(int(0.55 * cap) - const_bytes, 8 * per_row)
    tile_cap = budget // per_row
    if max_tile_rows is not None:
        tile_cap = min(tile_cap, max_tile_rows)
    tm = _pick_tile_rows(m_rows, tile_cap)
    est = tm * per_row + const_bytes
    vmem_limit = int(min(cap, max(est * 3 // 2, 16 * 1024 * 1024)))
    return tm, vmem_limit


# ----------------------------- wrapper ---------------------------------------


def transition_layer_pallas(x_nchw, conv_w, gamma, beta, eps=1e-5, *,
                            compute_dtype=jnp.bfloat16, max_tile_rows=None):
    """Conv2d(1x1, bias=False) -> BatchNorm2d (training-mode batch stats)
    -> ReLU -> AvgPool2d(2, 2).  NCHW in, NCHW out (f32)."""
    N, Cin, H, W = x_nchw.shape
    Cout = conv_w.shape[0]
    assert H % 2 == 0 and W % 2 == 0, "AvgPool2d(2,2) needs even H and W"
    H2, W2 = H // 2, W // 2
    M = N * H2 * W2                                      # pooled output pixels

    # Single layout pass: NCHW -> (pool parity, pooled pixel, Cin); the cast
    # to compute_dtype fuses into the same transpose.
    x6 = x_nchw.reshape(N, Cin, H2, 2, W2, 2).astype(compute_dtype)
    x_par = jnp.transpose(x6, (3, 5, 0, 2, 4, 1)).reshape(4, M, Cin)
    w_t = conv_w.T.astype(compute_dtype)                 # (Cin, Cout)

    itemsize = jnp.dtype(compute_dtype).itemsize
    tm, vmem_limit = _plan_tiles(M, Cin, Cout, itemsize, max_tile_rows)
    num_tiles = M // tm
    cparams = pltpu.CompilerParams(dimension_semantics=("parallel",),
                                   vmem_limit_bytes=vmem_limit)

    # ---- Pass 1: 1x1 conv + per-tile BN partial statistics. ----
    y_par, part_s, part_q = pl.pallas_call(
        _conv_stats_kernel,
        out_shape=(jax.ShapeDtypeStruct((4, M, Cout), compute_dtype),
                   jax.ShapeDtypeStruct((num_tiles, 1, Cout), jnp.float32),
                   jax.ShapeDtypeStruct((num_tiles, 1, Cout), jnp.float32)),
        grid=(num_tiles,),
        in_specs=[pl.BlockSpec((4, tm, Cin), lambda t: (0, t, 0)),
                  pl.BlockSpec((Cin, Cout), lambda t: (0, 0))],
        out_specs=(pl.BlockSpec((4, tm, Cout), lambda t: (0, t, 0)),
                   pl.BlockSpec((1, 1, Cout), lambda t: (t, 0, 0)),
                   pl.BlockSpec((1, 1, Cout), lambda t: (t, 0, 0))),
        compiler_params=cparams,
    )(x_par, w_t)

    # ---- Tiny BN-parameter math in plain JAX (f32; eps stays out of kernels,
    #      so changing eps never retraces the kernels). ----
    total = jnp.float32(N * H * W)
    s = jnp.sum(part_s[:, 0, :], axis=0)
    ss = jnp.sum(part_q[:, 0, :], axis=0)
    mean = s / total
    var = jnp.maximum(ss / total - mean * mean, 0.0)     # clamp cancellation
    inv_std = lax.rsqrt(var + jnp.float32(eps))
    g = gamma.astype(jnp.float32)
    scale = g * inv_std
    shift = beta.astype(jnp.float32) - mean * scale
    scale_shift = jnp.stack([scale, shift], axis=0)      # (2, Cout) f32

    # ---- Pass 2: BN scale/shift + ReLU + 2x2 average pool (parity sum). ----
    out2 = pl.pallas_call(
        _bn_relu_pool_kernel,
        out_shape=jax.ShapeDtypeStruct((M, Cout), jnp.float32),
        grid=(num_tiles,),
        in_specs=[pl.BlockSpec((4, tm, Cout), lambda t: (0, t, 0)),
                  pl.BlockSpec((2, Cout), lambda t: (0, 0))],
        out_specs=pl.BlockSpec((tm, Cout), lambda t: (t, 0)),
        compiler_params=cparams,
    )(y_par, scale_shift)

    # (M, Cout) -> NCHW (module contract requires NCHW output).
    return jnp.transpose(out2.reshape(N, H2, W2, Cout), (0, 3, 1, 2))


# ----------------------------- reference -------------------------------------


def transition_layer_ref(x_nchw, conv_w, gamma, beta, eps=1e-5):
    """Pure-JAX reference matching the PyTorch module in training mode."""
    N, Cin, H, W = x_nchw.shape
    Cout = conv_w.shape[0]
    conv = jnp.einsum('nchw,oc->nohw', x_nchw, conv_w)
    mean = conv.mean(axis=(0, 2, 3), keepdims=True)
    var = conv.var(axis=(0, 2, 3), keepdims=True)        # biased (train-mode BN)
    y = gamma.reshape(1, Cout, 1, 1) * (conv - mean) * lax.rsqrt(var + eps) \
        + beta.reshape(1, Cout, 1, 1)
    y = jnp.maximum(y, 0.0)
    return y.reshape(N, Cout, H // 2, 2, W // 2, 2).mean(axis=(3, 5))


# ----------------------------- demo / test ------------------------------------


if __name__ == "__main__":
    key = jax.random.PRNGKey(0)
    k_x, k_w, k_g, k_b = jax.random.split(key, 4)

    N, Cin, Cout, H, W = 2, 4, 8, 16, 16

    x = jax.random.normal(k_x, (N, Cin, H, W), dtype=jnp.float32)
    conv_w = jax.random.normal(k_w, (Cout, Cin), dtype=jnp.float32) * 0.5   # 1x1 conv, bias=False
    gamma = 1.0 + 0.1 * jax.random.normal(k_g, (Cout,), dtype=jnp.float32)  # BN weight
    beta = 0.1 * jax.random.normal(k_b, (Cout,), dtype=jnp.float32)         # BN bias

    ref = transition_layer_ref(x, conv_w, gamma, beta)

    # f32 compute path; small max_tile_rows so the demo exercises a multi-tile grid.
    out_f32 = jax.block_until_ready(
        transition_layer_pallas(x, conv_w, gamma, beta,
                                compute_dtype=jnp.float32, max_tile_rows=32))
    assert out_f32.shape == (N, Cout, H // 2, W // 2), out_f32.shape
    assert jnp.allclose(out_f32, ref, rtol=1e-4, atol=1e-4), \
        f"f32 max abs diff {float(jnp.max(jnp.abs(out_f32 - ref)))}"

    # bf16-input path (recommended on mem-bound shapes: halves the HBM traffic
    # of x and the conv intermediate; BN/ReLU/pool math stays f32).
    out_bf16 = jax.block_until_ready(
        transition_layer_pallas(x, conv_w, gamma, beta,
                                compute_dtype=jnp.bfloat16))
    assert out_bf16.shape == (N, Cout, H // 2, W // 2), out_bf16.shape
    assert jnp.allclose(out_bf16, ref, rtol=5e-2, atol=5e-2), \
        f"bf16 max abs diff {float(jnp.max(jnp.abs(out_bf16 - ref)))}"

    print("KERNEL_OK")
</pallas_src>

<mosaic_0001>
module attributes {stable_mosaic.version = 11 : i64} {
  func.func @_conv_stats_kernel(%arg0: i32, %arg1: memref<4x32x4xf32, #tpu.memory_space<vmem>>, %arg2: memref<4x8xf32, #tpu.memory_space<vmem>>, %arg3: memref<4x32x8xf32, #tpu.memory_space<vmem>>, %arg4: memref<1x1x8xf32, #tpu.memory_space<vmem>>, %arg5: memref<1x1x8xf32, #tpu.memory_space<vmem>>) attributes {dimension_semantics = [#tpu.dimension_semantics<parallel>], iteration_bounds = array<i64: 4>, scalar_prefetch = 0 : i64, scratch_operands = 0 : i64, tpu.core_type = #tpu.core_type<tc>, window_params = [{transform_indices = @transform_0, window_bounds = array<i64: 4, 32, 4>}, {pipeline_mode = #tpu.pipeline_mode<synchronous>, transform_indices = @transform_1, window_bounds = array<i64: 4, 8>}, {transform_indices = @transform_2, window_bounds = array<i64: 4, 32, 8>}, {transform_indices = @transform_3, window_bounds = array<i64: 1, 1, 8>}, {transform_indices = @transform_4, window_bounds = array<i64: 1, 1, 8>}]} {
    %cst = arith.constant 0.000000e+00 : f32
    %0 = vector.broadcast %cst : f32 to vector<1x8xf32>
    %cst_0 = arith.constant 0.000000e+00 : f32
    %1 = vector.broadcast %cst_0 : f32 to vector<1x8xf32>
    %c0 = arith.constant 0 : index
    %c0_1 = arith.constant 0 : index
    %c0_2 = arith.constant 0 : index
    %2 = vector.load %arg1[%c0, %c0_1, %c0_2] : memref<4x32x4xf32, #tpu.memory_space<vmem>>, vector<1x32x4xf32>
    %3 = vector.shape_cast %2 : vector<1x32x4xf32> to vector<32x4xf32>
    %c0_3 = arith.constant 0 : index
    %c0_4 = arith.constant 0 : index
    %4 = vector.load %arg2[%c0_3, %c0_4] : memref<4x8xf32, #tpu.memory_space<vmem>>, vector<4x8xf32>
    %cst_5 = arith.constant dense<0.000000e+00> : vector<32x8xf32>
    %5 = tpu.matmul %3, %4, %cst_5 {dimension_numbers = #tpu.dot_dimension_numbers<[1], [0], [0], [1], [0, 0, 1, 1], [], []>} : vector<32x4xf32>, vector<4x8xf32>, vector<32x8xf32> -> vector<32x8xf32>
    %c0_6 = arith.constant 0 : index
    %c0_7 = arith.constant 0 : index
    %c0_8 = arith.constant 0 : index
    %6 = vector.load %arg3[%c0_6, %c0_7, %c0_8] : memref<4x32x8xf32, #tpu.memory_space<vmem>>, vector<1x32x8xf32>
    %7 = vector.shape_cast %6 : vector<1x32x8xf32> to vector<32x8xf32>
    %8 = vector.shape_cast %5 : vector<32x8xf32> to vector<1x32x8xf32>
    tpu.vector_store %arg3[%c0_6, %c0_7, %c0_8], %8 {strides = array<i32>} : memref<4x32x8xf32, #tpu.memory_space<vmem>>, vector<1x32x8xf32>,
    %cst_9 = arith.constant dense<0.000000e+00> : vector<8xf32>
    %9 = vector.multi_reduction <add>, %5, %cst_9 [0] : vector<32x8xf32> to vector<8xf32>
    %10 = vector.shape_cast %9 : vector<8xf32> to vector<1x8xf32>
    %11 = arith.addf %0, %10 : vector<1x8xf32>
    %12 = arith.mulf %5, %5 : vector<32x8xf32>
    %cst_10 = arith.constant dense<0.000000e+00> : vector<8xf32>
    %13 = vector.multi_reduction <add>, %12, %cst_10 [0] : vector<32x8xf32> to vector<8xf32>
    %14 = vector.shape_cast %13 : vector<8xf32> to vector<1x8xf32>
    %15 = arith.addf %1, %14 : vector<1x8xf32>
    %c1 = arith.constant 1 : index
    %c0_11 = arith.constant 0 : index
    %c0_12 = arith.constant 0 : index
    %16 = vector.load %arg1[%c1, %c0_11, %c0_12] : memref<4x32x4xf32, #tpu.memory_space<vmem>>, vector<1x32x4xf32>
    %17 = vector.shape_cast %16 : vector<1x32x4xf32> to vector<32x4xf32>
    %c0_13 = arith.constant 0 : index
    %c0_14 = arith.constant 0 : index
    %18 = vector.load %arg2[%c0_13, %c0_14] : memref<4x8xf32, #tpu.memory_space<vmem>>, vector<4x8xf32>
    %cst_15 = arith.constant dense<0.000000e+00> : vector<32x8xf32>
    %19 = tpu.matmul %17, %18, %cst_15 {dimension_numbers = #tpu.dot_dimension_numbers<[1], [0], [0], [1], [0, 0, 1, 1], [], []>} : vector<32x4xf32>, vector<4x8xf32>, vector<32x8xf32> -> vector<32x8xf32>
    %c1_16 = arith.constant 1 : index
    %c0_17 = arith.constant 0 : index
    %c0_18 = arith.constant 0 : index
    %20 = vector.load %arg3[%c1_16, %c0_17, %c0_18] : memref<4x32x8xf32, #tpu.memory_space<vmem>>, vector<1x32x8xf32>
    %21 = vector.shape_cast %20 : vector<1x32x8xf32> to vector<32x8xf32>
    %22 = vector.shape_cast %19 : vector<32x8xf32> to vector<1x32x8xf32>
    tpu.vector_store %arg3[%c1_16, %c0_17, %c0_18], %22 {strides = array<i32>} : memref<4x32x8xf32, #tpu.memory_space<vmem>>, vector<1x32x8xf32>,
    %cst_19 = arith.constant dense<0.000000e+00> : vector<8xf32>
    %23 = vector.multi_reduction <add>, %19, %cst_19 [0] : vector<32x8xf32> to vector<8xf32>
    %24 = vector.shape_cast %23 : vector<8xf32> to vector<1x8xf32>
    %25 = arith.addf %11, %24 : vector<1x8xf32>
    %26 = arith.mulf %19, %19 : vector<32x8xf32>
    %cst_20 = arith.constant dense<0.000000e+00> : vector<8xf32>
    %27 = vector.multi_reduction <add>, %26, %cst_20 [0] : vector<32x8xf32> to vector<8xf32>
    %28 = vector.shape_cast %27 : vector<8xf32> to vector<1x8xf32>
    %29 = arith.addf %15, %28 : vector<1x8xf32>
    %c2 = arith.constant 2 : index
    %c0_21 = arith.constant 0 : index
    %c0_22 = arith.constant 0 : index
    %30 = vector.load %arg1[%c2, %c0_21, %c0_22] : memref<4x32x4xf32, #tpu.memory_space<vmem>>, vector<1x32x4xf32>
    %31 = vector.shape_cast %30 : vector<1x32x4xf32> to vector<32x4xf32>
    %c0_23 = arith.constant 0 : index
    %c0_24 = arith.constant 0 : index
    %32 = vector.load %arg2[%c0_23, %c0_24] : memref<4x8xf32, #tpu.memory_space<vmem>>, vector<4x8xf32>
    %cst_25 = arith.constant dense<0.000000e+00> : vector<32x8xf32>
    %33 = tpu.matmul %31, %32, %cst_25 {dimension_numbers = #tpu.dot_dimension_numbers<[1], [0], [0], [1], [0, 0, 1, 1], [], []>} : vector<32x4xf32>, vector<4x8xf32>, vector<32x8xf32> -> vector<32x8xf32>
    %c2_26 = arith.constant 2 : index
    %c0_27 = arith.constant 0 : index
    %c0_28 = arith.constant 0 : index
    %34 = vector.load %arg3[%c2_26, %c0_27, %c0_28] : memref<4x32x8xf32, #tpu.memory_space<vmem>>, vector<1x32x8xf32>
    %35 = vector.shape_cast %34 : vector<1x32x8xf32> to vector<32x8xf32>
    %36 = vector.shape_cast %33 : vector<32x8xf32> to vector<1x32x8xf32>
    tpu.vector_store %arg3[%c2_26, %c0_27, %c0_28], %36 {strides = array<i32>} : memref<4x32x8xf32, #tpu.memory_space<vmem>>, vector<1x32x8xf32>,
    %cst_29 = arith.constant dense<0.000000e+00> : vector<8xf32>
    %37 = vector.multi_reduction <add>, %33, %cst_29 [0] : vector<32x8xf32> to vector<8xf32>
    %38 = vector.shape_cast %37 : vector<8xf32> to vector<1x8xf32>
    %39 = arith.addf %25, %38 : vector<1x8xf32>
    %40 = arith.mulf %33, %33 : vector<32x8xf32>
    %cst_30 = arith.constant dense<0.000000e+00> : vector<8xf32>
    %41 = vector.multi_reduction <add>, %40, %cst_30 [0] : vector<32x8xf32> to vector<8xf32>
    %42 = vector.shape_cast %41 : vector<8xf32> to vector<1x8xf32>
    %43 = arith.addf %29, %42 : vector<1x8xf32>
    %c3 = arith.constant 3 : index
    %c0_31 = arith.constant 0 : index
    %c0_32 = arith.constant 0 : index
    %44 = vector.load %arg1[%c3, %c0_31, %c0_32] : memref<4x32x4xf32, #tpu.memory_space<vmem>>, vector<1x32x4xf32>
    %45 = vector.shape_cast %44 : vector<1x32x4xf32> to vector<32x4xf32>
    %c0_33 = arith.constant 0 : index
    %c0_34 = arith.constant 0 : index
    %46 = vector.load %arg2[%c0_33, %c0_34] : memref<4x8xf32, #tpu.memory_space<vmem>>, vector<4x8xf32>
    %cst_35 = arith.constant dense<0.000000e+00> : vector<32x8xf32>
    %47 = tpu.matmul %45, %46, %cst_35 {dimension_numbers = #tpu.dot_dimension_numbers<[1], [0], [0], [1], [0, 0, 1, 1], [], []>} : vector<32x4xf32>, vector<4x8xf32>, vector<32x8xf32> -> vector<32x8xf32>
    %c3_36 = arith.constant 3 : index
    %c0_37 = arith.constant 0 : index
    %c0_38 = arith.constant 0 : index
    %48 = vector.load %arg3[%c3_36, %c0_37, %c0_38] : memref<4x32x8xf32, #tpu.memory_space<vmem>>, vector<1x32x8xf32>
    %49 = vector.shape_cast %48 : vector<1x32x8xf32> to vector<32x8xf32>
    %50 = vector.shape_cast %47 : vector<32x8xf32> to vector<1x32x8xf32>
    tpu.vector_store %arg3[%c3_36, %c0_37, %c0_38], %50 {strides = array<i32>} : memref<4x32x8xf32, #tpu.memory_space<vmem>>, vector<1x32x8xf32>,
    %cst_39 = arith.constant dense<0.000000e+00> : vector<8xf32>
    %51 = vector.multi_reduction <add>, %47, %cst_39 [0] : vector<32x8xf32> to vector<8xf32>
    %52 = vector.shape_cast %51 : vector<8xf32> to vector<1x8xf32>
    %53 = arith.addf %39, %52 : vector<1x8xf32>
    %54 = arith.mulf %47, %47 : vector<32x8xf32>
    %cst_40 = arith.constant dense<0.000000e+00> : vector<8xf32>
    %55 = vector.multi_reduction <add>, %54, %cst_40 [0] : vector<32x8xf32> to vector<8xf32>
    %56 = vector.shape_cast %55 : vector<8xf32> to vector<1x8xf32>
    %57 = arith.addf %43, %56 : vector<1x8xf32>
    %58 = vector.shape_cast %53 : vector<1x8xf32> to vector<1x1x8xf32>
    %c0_41 = arith.constant 0 : index
    %c0_42 = arith.constant 0 : index
    %c0_43 = arith.constant 0 : index
    %59 = vector.load %arg4[%c0_41, %c0_42, %c0_43] : memref<1x1x8xf32, #tpu.memory_space<vmem>>, vector<1x1x8xf32>
    tpu.vector_store %arg4[%c0_41, %c0_42, %c0_43], %58 {strides = array<i32>} : memref<1x1x8xf32, #tpu.memory_space<vmem>>, vector<1x1x8xf32>,
    %60 = vector.shape_cast %57 : vector<1x8xf32> to vector<1x1x8xf32>
    %c0_44 = arith.constant 0 : index
    %c0_45 = arith.constant 0 : index
    %c0_46 = arith.constant 0 : index
    %61 = vector.load %arg5[%c0_44, %c0_45, %c0_46] : memref<1x1x8xf32, #tpu.memory_space<vmem>>, vector<1x1x8xf32>
    tpu.vector_store %arg5[%c0_44, %c0_45, %c0_46], %60 {strides = array<i32>} : memref<1x1x8xf32, #tpu.memory_space<vmem>>, vector<1x1x8xf32>,
    return
  }
  func.func @transform_0(%arg0: i32) -> (i32, i32, i32) {
    %c0_i32 = arith.constant 0 : i32
    %c0_i32_0 = arith.constant 0 : i32
    %c0_i32_1 = arith.constant 0 : i32
    return %c0_i32, %arg0, %c0_i32_0 : i32, i32, i32
  }
  func.func @transform_1(%arg0: i32) -> (i32, i32) {
    %c0_i32 = arith.constant 0 : i32
    %c0_i32_0 = arith.constant 0 : i32
    %c0_i32_1 = arith.constant 0 : i32
    return %c0_i32, %c0_i32_0 : i32, i32
  }
  func.func @transform_2(%arg0: i32) -> (i32, i32, i32) {
    %c0_i32 = arith.constant 0 : i32
    %c0_i32_0 = arith.constant 0 : i32
    %c0_i32_1 = arith.constant 0 : i32
    return %c0_i32, %arg0, %c0_i32_0 : i32, i32, i32
  }
  func.func @transform_3(%arg0: i32) -> (i32, i32, i32) {
    %c0_i32 = arith.constant 0 : i32
    %c0_i32_0 = arith.constant 0 : i32
    %c0_i32_1 = arith.constant 0 : i32
    return %arg0, %c0_i32, %c0_i32_0 : i32, i32, i32
  }
  func.func @transform_4(%arg0: i32) -> (i32, i32, i32) {
    %c0_i32 = arith.constant 0 : i32
    %c0_i32_0 = arith.constant 0 : i32
    %c0_i32_1 = arith.constant 0 : i32
    return %arg0, %c0_i32, %c0_i32_0 : i32, i32, i32
  }
}

</mosaic_0001>

<bundles_post_ra>
// kernel: tpu_custom_call.1
= control target key start
LH: loop header
LB: loop body
LE: loop exit
PB: predicated region body
PF: predicated region fallthrough
CT: control target
= control target key end

     0   :  { %10 = vsyncpa [#allocation5], 0  ;;  %s1394_s0 = inlined_call_operand.vmem [shape: f32[4,128,4], index: 0, kind: input, shape index: {}]   ;;  %s1395_s1 = inlined_call_operand.vmem [shape: f32[4,8], index: 1, kind: input, shape index: {}]   ;;  %s1396_s2 = inlined_call_operand.vmem [shape: f32[4,128,8], index: 2, kind: output, shape index: {0}]   ;;  %s1397_s3 = inlined_call_operand.hbm [shape: f32[4,1,8], index: 3, kind: output, shape index: {1}]   ;;  %s1398_s4 = inlined_call_operand.hbm [shape: f32[4,1,8], index: 4, kind: output, shape index: {2}]  }
   0x1   :  { %12 = vsyncpa [#allocation5 + $0x1], 0 }
   0x2   :  { %13 = vsyncpa [#allocation7], 0 }
   0x3   :  { %15 = vsyncpa [#allocation7 + $0x1], 0  ;;  %s1136_s15 = smov 0   ;;  %s1138_s16 = smov 0  }
   0x4   :  { %s1140_s17 = smov 0   ;;  %s1142_s18 = smov 0  }
   0x5 LB: > { %s1157_s19 = sadd.s32 4294967295, %s1109_s18   ;;  %s911_s20 = sadd.s32 4294967294, %s1109_s18   ;;  %s1109_s18 = sphi %s1142_s18, %s1404_s18   ;;  %s1105_s17 = sphi %s1140_s17, %s1403_s17   ;;  %s1101_s16 = sphi %s1138_s16, %s1402_s16   ;;  %s1097_s15 = sphi %s1136_s15, %s1401_s15  }
   0x6   : > { %s1161_s21 = sadd.s32 1, %s1109_s18   ;;  %s28_s22 = sadd.s32 1, %s1105_s17 }
   0x7   : > { %s25_s23 = ssub.s32 %s1109_s18, %s1161_s21  ;;  %p35_p0 = scmp.ne.s32.totalorder %s1105_s17, %s1101_s16 }
   0x8   : > { %p26_p1 = scmp.eq.s32.totalorder %s25_s23, 0  ;;  %p36_p2 = scmp.eq.s32.totalorder %s1109_s18, 0 }
   0x9   : > { %p86_p3 = scmp.eq.s32.totalorder %s1157_s19, 3  ;;  %p117_p4 = scmp.ne.s32.totalorder %s1101_s16, %s1097_s15 }
   0xa   : > { %s1173_s24 = scalar_select %p26_p1, %s1105_s17, %s28_s22  }
   0xb   : > { %p37_p5 = por %p36_p2, %p35_p0  ;;  %p1175_p6 = por %p86_p3, %p35_p0 }
   0xc   : > { %p118_p7 = scmp.eq.s32.totalorder %s911_s20, 3  ;;  %p913_p9 = scmp.ge.s32.totalorder %s1109_s18, 4 }
   0xe   : > { %p1179_p8 = por %p118_p7, %p117_p4  ;;  %163 = sbr.rel (%p913_p9) target bundleno = 39 (0x27), region = 20 }
  0x13   : > { %166 = sbr.rel (!%p37_p5) target bundleno = 39 (0x27), region = 24  ;;  %s168_s27 = sand.u32 (%p37_p5), 1, %s1105_s17  }
  0x14   : > { %s969_s28 = sshll.u32 (%p37_p5), %s1109_s18, 5  ;;  %s914_s29 = sshll.u32 (%p37_p5), %s168_s27, 7 }
  0x15   : > { %s1189_s6 = scalar_lea.vmem (%p37_p5), %s1394_s0, %s969_s28  ;;  %s170_s7 = scalar_lea.vmem (%p37_p5), [#allocation2], %s914_s29 }
  0x16   : > { %v232_v0 = vld [vmem:[%s1189_s6] sm:$0xff] (%p37_p5)  ;;  %v234_v1 = vld [vmem:[%s1189_s6 + $0x8] sm:$0xff] (%p37_p5)  ;;  %v236_v2 = vld [vmem:[%s1189_s6 + $0x10] sm:$0xff] (%p37_p5) }
  0x17   : > { %233 = vst [vmem:[%s170_s7] sm:$0xff] (%p37_p5), %v232_v0  ;;  %v238_v3 = vld [vmem:[%s1189_s6 + $0x18] sm:$0xff] (%p37_p5)  ;;  %v240_v4 = vld [vmem:[%s1189_s6 + $0x80] sm:$0xff] (%p37_p5)  ;;  %v242_v5 = vld [vmem:[%s1189_s6 + $0x88] sm:$0xff] (%p37_p5) }
  0x18   : > { %235 = vst [vmem:[%s170_s7 + $0x8] sm:$0xff] %v234_v1  ;;  %v244_v6 = vld [vmem:[%s1189_s6 + $0x90] sm:$0xff]  ;;  %v246_v7 = vld [vmem:[%s1189_s6 + $0x98] sm:$0xff]  ;;  %v248_v8 = vld [vmem:[%s1189_s6 + $0x100] sm:$0xff] }
  0x19   : > { %237 = vst [vmem:[%s170_s7 + $0x10] sm:$0xff] %v236_v2  ;;  %v250_v9 = vld [vmem:[%s1189_s6 + $0x108] sm:$0xff]  ;;  %v252_v10 = vld [vmem:[%s1189_s6 + $0x110] sm:$0xff]  ;;  %v254_v11 = vld [vmem:[%s1189_s6 + $0x118] sm:$0xff] }
  0x1a   : > { %239 = vst [vmem:[%s170_s7 + $0x18] sm:$0xff] %v238_v3  ;;  %v256_v12 = vld [vmem:[%s1189_s6 + $0x180] sm:$0xff]  ;;  %v258_v13 = vld [vmem:[%s1189_s6 + $0x188] sm:$0xff]  ;;  %v260_v14 = vld [vmem:[%s1189_s6 + $0x190] sm:$0xff] }
  0x1b   : > { %241 = vst [vmem:[%s170_s7 + $0x20] sm:$0xff] %v240_v4  ;;  %v262_v15 = vld [vmem:[%s1189_s6 + $0x198] sm:$0xff] }
  0x1c   : > { %243 = vst [vmem:[%s170_s7 + $0x28] sm:$0xff] %v242_v5 }
  0x1d   : > { %245 = vst [vmem:[%s170_s7 + $0x30] sm:$0xff] %v244_v6 }
  0x1e   : > { %247 = vst [vmem:[%s170_s7 + $0x38] sm:$0xff] %v246_v7 }
  0x1f   : > { %249 = vst [vmem:[%s170_s7 + $0x40] sm:$0xff] %v248_v8 }
  0x20   : > { %251 = vst [vmem:[%s170_s7 + $0x48] sm:$0xff] %v250_v9 }
  0x21   : > { %253 = vst [vmem:[%s170_s7 + $0x50] sm:$0xff] %v252_v10 }
  0x22   : > { %255 = vst [vmem:[%s170_s7 + $0x58] sm:$0xff] %v254_v11 }
  0x23   : > { %257 = vst [vmem:[%s170_s7 + $0x60] sm:$0xff] %v256_v12 }
  0x24   : > { %259 = vst [vmem:[%s170_s7 + $0x68] sm:$0xff] %v258_v13 }
  0x25   : > { %261 = vst [vmem:[%s170_s7 + $0x70] sm:$0xff] %v260_v14 }
  0x26   : > { %263 = vst [vmem:[%s170_s7 + $0x78] sm:$0xff] %v262_v15 }
  0x27 PF: > { %p917_p10 = scmp.ge.s32.totalorder %s1109_s18, 1  ;;  %p268_p11 = scmp.lt.s32.totalorder %s1109_s18, 5 }
  0x29   : > { %p269_p12 = pnand %p917_p10, %p268_p11 }
  0x2a   : > { %s1216_s12 = sand.u32 (!%p269_p12), 1, %s1101_s16  }
  0x2b   : > { %272 = sbr.rel (%p269_p12) target bundleno = 262 (0x106), region = 62  ;;  %s918_s23 = sshll.u32 (!%p269_p12), %s1216_s12, 7 }
  0x2c   : > { %s277_s27 = scalar_lea.vmem (!%p269_p12), [#allocation2], %s918_s23  ;;  %s1245_s28 = scalar_lea.vmem (!%p269_p12), [#allocation3], %s918_s23 }
  0x2d   : > { %s300_s29 = scalar_lea.vmem (!%p269_p12), [#allocation4], %s1216_s12  ;;  %s306_s30 = scalar_lea.vmem (!%p269_p12), [#allocation6], %s1216_s12 }
  0x2e   : > { %s666_s5 = scalar_lea.sflag (!%p269_p12), [#allocation5], %s1216_s12  ;;  %s670_s6 = scalar_lea.sflag (!%p269_p12), [#allocation7], %s1216_s12 }
  0x30   : > { %v313_v16 = vld [vmem:[%s1395_s1] sm:$0xf]  ;;  %vm327_vm0 = vcmask 1043456   ;;  %vm314_vm1 = vcmask 31744   ;;  %v310_v24 = vld [vmem:[%s277_s27 + $0x8] sm:$0xff]  ;;  %v311_v28 = vld [vmem:[%s277_s27 + $0x10] sm:$0xff] }
  0x31   : > { %v402_v17 = vld [vmem:[%s1395_s1] sm:$0xf]  ;;  %920 = vmatpush.msk.msra.mxu0 %vm327_vm0, %v313_v16  ;;  %v926_v25 = vld [vmem:[%s277_s27 + $0x28] sm:$0xff]  ;;  %v927_v29 = vld [vmem:[%s277_s27 + $0x30] sm:$0xff]  ;;  %vm360_vm2 = vcmask 64512   ;;  %vm658_vm3 = vcmask 57344  }
  0x32   : > { %929 = vmatpush.msk.msra.mxu1 %vm327_vm0, %v402_v17  ;;  %v489_v18 = vld [vmem:[%s1395_s1] sm:$0xf]  ;;  %v939_v26 = vld [vmem:[%s277_s27 + $0x48] sm:$0xff]  ;;  %v940_v30 = vld [vmem:[%s277_s27 + $0x50] sm:$0xff]  ;;  %s970_s7 = sshll.u32 (%p1175_p6), %s1157_s19, 5 }
  0x33   : > { %v576_v19 = vld [vmem:[%s1395_s1] sm:$0xf]  ;;  %942 = vmatpush.msk.msra.mxu2 %vm327_vm0, %v489_v18  ;;  %v952_v27 = vld [vmem:[%s277_s27 + $0x68] sm:$0xff]  ;;  %v953_v31 = vld [vmem:[%s277_s27 + $0x70] sm:$0xff]  ;;  %s678_s10 = scalar_lea.vmem (%p1175_p6), %s1396_s2, %s970_s7 }
  0x34   : > { %955 = vmatpush.msk.msra.mxu3 %vm327_vm0, %v576_v19  ;;  %v309_v20 = vld [vmem:[%s277_s27] sm:$0xff]  ;;  %v312_v32 = vld [vmem:[%s277_s27 + $0x18] sm:$0xff] }
  0x35   : > { %v925_v21 = vld [vmem:[%s277_s27 + $0x20] sm:$0xff]  ;;  %921 = vmatmul.msk.f32.vlgmr.msra.gmra.mxu0 %vm314_vm1, %v309_v20  ;;  %v928_v33 = vld [vmem:[%s277_s27 + $0x38] sm:$0xff] }
  0x36   : > { %v938_v22 = vld [vmem:[%s277_s27 + $0x40] sm:$0xff]  ;;  %930 = vmatmul.msk.f32.vlgmr.msra.gmra.mxu1 %vm314_vm1, %v925_v21  ;;  %v941_v34 = vld [vmem:[%s277_s27 + $0x58] sm:$0xff] }
  0x37   : > { %v951_v23 = vld [vmem:[%s277_s27 + $0x60] sm:$0xff]  ;;  %943 = vmatmul.msk.f32.vlgmr.msra.gmra.mxu2 %vm314_vm1, %v938_v22  ;;  %v954_v35 = vld [vmem:[%s277_s27 + $0x78] sm:$0xff] }
  0x38   : > { %956 = vmatmul.msk.f32.vlgmr.msra.gmra.mxu3 %vm314_vm1, %v951_v23 }
  0x3d   : > { %922 = vmatmul.msk.f32.gmra.mxu0 %vm314_vm1, %v310_v24 }
  0x3e   : > { %931 = vmatmul.msk.f32.gmra.mxu1 %vm314_vm1, %v926_v25 }
  0x3f   : > { %944 = vmatmul.msk.f32.gmra.mxu2 %vm314_vm1, %v939_v26 }
  0x40   : > { %957 = vmatmul.msk.f32.gmra.mxu3 %vm314_vm1, %v952_v27 }
  0x45   : > { %923 = vmatmul.msk.f32.gmra.mxu0 %vm314_vm1, %v311_v28 }
  0x46   : > { %932 = vmatmul.msk.f32.gmra.mxu1 %vm314_vm1, %v927_v29 }
  0x47   : > { %945 = vmatmul.msk.f32.gmra.mxu2 %vm314_vm1, %v940_v30 }
  0x48   : > { %958 = vmatmul.msk.f32.gmra.mxu3 %vm314_vm1, %v953_v31 }
  0x4d   : > { %924 = vmatmul.msk.f32.gmra.mxu0 %vm314_vm1, %v312_v32 }
  0x4e   : > { %933 = vmatmul.msk.f32.gmra.mxu1 %vm314_vm1, %v928_v33 }
  0x4f   : > { %946 = vmatmul.msk.f32.gmra.mxu2 %vm314_vm1, %v941_v34 }
  0x50   : > { %959 = vmatmul.msk.f32.gmra.mxu3 %vm314_vm1, %v954_v35 }
  0xb2   : > { %v348_v36 = vpop.f32.mrf.mxu0 }
  0xb3   : > { %v435_v37 = vpop.f32.mrf.mxu1  ;;  %361 = vst.msk [vmem:[%s1245_s28] sm:$0xff] %vm360_vm2, %v348_v36  ;;  %v379_v42 = vmul.f32 %v348_v36, %v348_v36  ;;  %v365_v48 = vsel %vm360_vm2, %v348_v36, 0.0 }
  0xb4   : > { %934 = vst.msk [vmem:[%s1245_s28 + $0x20] sm:$0xff] %vm360_vm2, %v435_v37  ;;  %v466_v43 = vmul.f32 %v435_v37, %v435_v37  ;;  %v452_v53 = vsel %vm360_vm2, %v435_v37, 0.0 }
  0xb5   : > { %v383_v52 = vsel %vm360_vm2, %v379_v42, 0.0 }
  0xb6   : > { %v470_v56 = vsel %vm360_vm2, %v466_v43, 0.0 }
  0xba   : > { %v522_v38 = vpop.f32.mrf.mxu2  ;;  %v351_v40 = vpop.f32.mrf.mxu0 }
  0xbb   : > { %v609_v39 = vpop.f32.mrf.mxu3  ;;  %947 = vst.msk [vmem:[%s1245_s28 + $0x40] sm:$0xff] %vm360_vm2, %v522_v38  ;;  %v438_v41 = vpop.f32.mrf.mxu1  ;;  %v553_v44 = vmul.f32 %v522_v38, %v522_v38  ;;  %v380_v45 = vmul.f32 %v351_v40, %v351_v40  ;;  %v539_v57 = vsel %vm360_vm2, %v522_v38, 0.0  ;;  %v366_v58 = vsel %vm360_vm2, %v351_v40, 0.0 }
  0xbc   : > { %960 = vst.msk [vmem:[%s1245_s28 + $0x60] sm:$0xff] %vm360_vm2, %v609_v39  ;;  %v467_v49 = vmul.f32 %v438_v41, %v438_v41  ;;  %v640_v54 = vmul.f32 %v609_v39, %v609_v39  ;;  %v626_v61 = vsel %vm360_vm2, %v609_v39, 0.0  ;;  %v453_v63 = vsel %vm360_vm2, %v438_v41, 0.0 }
  0xbd   : > { %362 = vst.msk [vmem:[%s1245_s28 + $0x8] sm:$0xff] %vm360_vm2, %v351_v40  ;;  %v557_v60 = vsel %vm360_vm2, %v553_v44, 0.0  ;;  %v384_v62 = vsel %vm360_vm2, %v380_v45, 0.0  ;;  %v367_v5 = vadd.f32 %v366_v58, %v365_v48  ;;  %v454_v8 = vadd.f32 %v453_v63, %v452_v53 }
  0xbe   : > { %935 = vst.msk [vmem:[%s1245_s28 + $0x28] sm:$0xff] %vm360_vm2, %v438_v41  ;;  %v471_v0 = vsel %vm360_vm2, %v467_v49, 0.0  ;;  %v644_v4 = vsel %vm360_vm2, %v640_v54, 0.0  ;;  %v385_v12 = vadd.f32 %v384_v62, %v383_v52 }
  0xbf   : > { %v472_v13 = vadd.f32 %v471_v0, %v470_v56 }
  0xc2   : > { %v525_v46 = vpop.f32.mrf.mxu2  ;;  %v354_v50 = vpop.f32.mrf.mxu0 }
  0xc3   : > { %v612_v47 = vpop.f32.mrf.mxu3  ;;  %948 = vst.msk [vmem:[%s1245_s28 + $0x48] sm:$0xff] %vm360_vm2, %v525_v46  ;;  %v441_v51 = vpop.f32.mrf.mxu1  ;;  %v554_v55 = vmul.f32 %v525_v46, %v525_v46  ;;  %v381_v59 = vmul.f32 %v354_v50, %v354_v50  ;;  %v540_v1 = vsel %vm360_vm2, %v525_v46, 0.0  ;;  %v368_v7 = vsel %vm360_vm2, %v354_v50, 0.0 }
  0xc4   : > { %961 = vst.msk [vmem:[%s1245_s28 + $0x68] sm:$0xff] %vm360_vm2, %v612_v47  ;;  %v627_v2 = vsel %vm360_vm2, %v612_v47, 0.0  ;;  %v641_v3 = vmul.f32 %v612_v47, %v612_v47  ;;  %v455_v10 = vsel %vm360_vm2, %v441_v51, 0.0  ;;  %v468_v11 = vmul.f32 %v441_v51, %v441_v51 }
  0xc5   : > { %363 = vst.msk [vmem:[%s1245_s28 + $0x10] sm:$0xff] %vm360_vm2, %v354_v50  ;;  %v558_v6 = vsel %vm360_vm2, %v554_v55, 0.0  ;;  %v386_v9 = vsel %vm360_vm2, %v381_v59, 0.0  ;;  %v541_v14 = vadd.f32 %v540_v1, %v539_v57  ;;  %v628_v15 = vadd.f32 %v627_v2, %v626_v61 }
  0xc6   : > { %936 = vst.msk [vmem:[%s1245_s28 + $0x30] sm:$0xff] %vm360_vm2, %v441_v51  ;;  %v559_v18 = vadd.f32 %v558_v6, %v557_v60  ;;  %v645_v19 = vsel %vm360_vm2, %v641_v3, 0.0  ;;  %v369_v20 = vadd.f32 %v368_v7, %v367_v5  ;;  %v387_v24 = vadd.f32 %v386_v9, %v385_v12 }
  0xc7   : > { %v456_v25 = vadd.f32 %v455_v10, %v454_v8  ;;  %v473_v28 = vsel %vm360_vm2, %v468_v11, 0.0  ;;  %v646_v40 = vadd.f32 %v645_v19, %v644_v4 }
  0xc8   : > { %v474_v41 = vadd.f32 %v473_v28, %v472_v13 }
  0xca   : > { %v528_v16 = vpop.f32.mrf.mxu2  ;;  %v357_v22 = vpop.f32.mrf.mxu0 }
  0xcb   : > { %v615_v17 = vpop.f32.mrf.mxu3  ;;  %949 = vst.msk [vmem:[%s1245_s28 + $0x50] sm:$0xff] %vm360_vm2, %v528_v16  ;;  %v555_v21 = vmul.f32 %v528_v16, %v528_v16  ;;  %v444_v23 = vpop.f32.mrf.mxu1  ;;  %v370_v26 = vsel %vm360_vm2, %v357_v22, 0.0  ;;  %v382_v27 = vmul.f32 %v357_v22, %v357_v22  ;;  %v542_v29 = vsel %vm360_vm2, %v528_v16, 0.0 }
  0xcc   : > { %962 = vst.msk [vmem:[%s1245_s28 + $0x70] sm:$0xff] %vm360_vm2, %v615_v17  ;;  %v371_v30 = vadd.f32 %v370_v26, %v369_v20  ;;  %v457_v31 = vsel %vm360_vm2, %v444_v23, 0.0  ;;  %v629_v32 = vsel %vm360_vm2, %v615_v17, 0.0  ;;  %v642_v33 = vmul.f32 %v615_v17, %v615_v17 }
  0xcd   : > { %364 = vst.msk [vmem:[%s1245_s28 + $0x18] sm:$0xff] %vm360_vm2, %v357_v22  ;;  %v388_v34 = vsel %vm360_vm2, %v382_v27, 0.0  ;;  %v458_v35 = vadd.f32 %v457_v31, %v456_v25  ;;  %v560_v36 = vsel %vm360_vm2, %v555_v21, 0.0  ;;  %v469_v39 = vmul.f32 %v444_v23, %v444_v23 }
  0xce   : > { %937 = vst.msk [vmem:[%s1245_s28 + $0x38] sm:$0xff] %vm360_vm2, %v444_v23  ;;  %v372_v37 = vrot.slane %v371_v30, 4  ;;  %v389_v38 = vadd.f32 %v388_v34, %v387_v24  ;;  %v543_v42 = vadd.f32 %v542_v29, %v541_v14  ;;  %v630_v44 = vadd.f32 %v629_v32, %v628_v15 }
  0xcf   : > { %v459_v43 = vrot.slane %v458_v35, 4  ;;  %v475_v47 = vsel %vm360_vm2, %v469_v39, 0.0  ;;  %v561_v48 = vadd.f32 %v560_v36, %v559_v18  ;;  %v647_v49 = vsel %vm360_vm2, %v642_v33, 0.0 }
  0xd0   : > { %v373_v45 = vadd.f32 %v372_v37, %v371_v30  ;;  %v390_v46 = vrot.slane %v389_v38, 4  ;;  %v476_v51 = vadd.f32 %v475_v47, %v474_v41  ;;  %v648_v14 = vadd.f32 %v647_v49, %v646_v40 }
  0xd1   : > { %v460_v50 = vadd.f32 %v459_v43, %v458_v35 }
  0xd2   : > { %v531_v52 = vpop.f32.mrf.mxu2  ;;  %v374_v54 = vrot.slane %v373_v45, 2  ;;  %v391_v55 = vadd.f32 %v390_v46, %v389_v38  ;;  %v477_v59 = vrot.slane %v476_v51, 4 }
  0xd3   : > { %v618_v53 = vpop.f32.mrf.mxu3  ;;  %950 = vst.msk [vmem:[%s1245_s28 + $0x58] sm:$0xff] %vm360_vm2, %v531_v52  ;;  %v544_v56 = vsel %vm360_vm2, %v531_v52, 0.0  ;;  %v556_v57 = vmul.f32 %v531_v52, %v531_v52  ;;  %v461_v58 = vrot.slane %v460_v50, 2  ;;  %v741_v52 = vld [vmem:[%s1245_s28 + $0x10] sm:$0xff] (%p1175_p6) }
  0xd4   : > { %v545_v60 = vadd.f32 %v544_v56, %v543_v42  ;;  %963 = vst.msk [vmem:[%s1245_s28 + $0x78] sm:$0xff] %vm360_vm2, %v618_v53  ;;  %v631_v61 = vsel %vm360_vm2, %v618_v53, 0.0  ;;  %v375_v62 = vadd.f32 %v374_v54, %v373_v45  ;;  %v392_v63 = vrot.slane %v391_v55, 2  ;;  %v745_v54 = vld [vmem:[%s1245_s28 + $0x20] sm:$0xff] (%p1175_p6)  ;;  %v749_v56 = vld [vmem:[%s1245_s28 + $0x30] sm:$0xff] (%p1175_p6) }
  0xd5   : > { %v562_v0 = vsel %vm360_vm2, %v556_v57, 0.0  ;;  %v632_v1 = vadd.f32 %v631_v61, %v630_v44  ;;  %v462_v2 = vadd.f32 %v461_v58, %v460_v50  ;;  %v478_v3 = vadd.f32 %v477_v59, %v476_v51  ;;  %v737_v50 = vld [vmem:[%s1245_s28] sm:$0xff] (%p1175_p6)  ;;  %v739_v51 = vld [vmem:[%s1245_s28 + $0x8] sm:$0xff] (%p1175_p6)  ;;  %742 = vst [vmem:[%s678_s10 + $0x10] sm:$0xff] (%p1175_p6), %v741_v52  ;;  %v751_v57 = vld [vmem:[%s1245_s28 + $0x38] sm:$0xff] (%p1175_p6) }
  0xd6   : > { %v546_v4 = vrot.slane %v545_v60, 4  ;;  %v563_v5 = vadd.f32 %v562_v0, %v561_v48  ;;  %v376_v6 = vrot.slane %v375_v62, 1  ;;  %v393_v7 = vadd.f32 %v392_v63, %v391_v55  ;;  %738 = vst [vmem:[%s678_s10] sm:$0xff] (%p1175_p6), %v737_v50  ;;  %v747_v55 = vld [vmem:[%s1245_s28 + $0x28] sm:$0xff] (%p1175_p6)  ;;  %v753_v58 = vld [vmem:[%s1245_s28 + $0x40] sm:$0xff] (%p1175_p6)  ;;  %v765_v0 = vld [vmem:[%s1245_s28 + $0x70] sm:$0xff] (%p1175_p6) }
  0xd7   : > { %v633_v8 = vrot.slane %v632_v1, 4  ;;  %v643_v9 = vmul.f32 %v618_v53, %v618_v53  ;;  %v463_v10 = vrot.slane %v462_v2, 1  ;;  %v479_v11 = vrot.slane %v478_v3, 2  ;;  %v743_v53 = vld [vmem:[%s1245_s28 + $0x18] sm:$0xff] (%p1175_p6)  ;;  %740 = vst [vmem:[%s678_s10 + $0x8] sm:$0xff] (%p1175_p6), %v739_v51  ;;  %v755_v59 = vld [vmem:[%s1245_s28 + $0x48] sm:$0xff] (%p1175_p6) }
  0xd8   : > { %v547_v12 = vadd.f32 %v546_v4, %v545_v60  ;;  %v564_v13 = vrot.slane %v563_v5, 4  ;;  %v377_v20 = vadd.f32 %v376_v6, %v375_v62  ;;  %v394_v21 = vrot.slane %v393_v7, 1  ;;  %744 = vst [vmem:[%s678_s10 + $0x18] sm:$0xff] (%p1175_p6), %v743_v53  ;;  %v757_v60 = vld [vmem:[%s1245_s28 + $0x50] sm:$0xff] (%p1175_p6)  ;;  %v761_v62 = vld [vmem:[%s1245_s28 + $0x60] sm:$0xff] (%p1175_p6)  ;;  %v763_v63 = vld [vmem:[%s1245_s28 + $0x68] sm:$0xff] (%p1175_p6) }
  0xd9   : > { %v634_v15 = vadd.f32 %v633_v8, %v632_v1  ;;  %v649_v16 = vsel %vm360_vm2, %v643_v9, 0.0  ;;  %v480_v17 = vadd.f32 %v479_v11, %v478_v3  ;;  %v464_v24 = vadd.f32 %v463_v10, %v462_v2  ;;  %746 = vst [vmem:[%s678_s10 + $0x80] sm:$0xff] (%p1175_p6), %v745_v54 }
  0xda   : > { %v548_v18 = vrot.slane %v547_v12, 2  ;;  %v565_v19 = vadd.f32 %v564_v13, %v563_v5  ;;  %v650_v23 = vadd.f32 %v649_v16, %v648_v14  ;;  %v395_v32 = vadd.f32 %v394_v21, %v393_v7  ;;  %748 = vst [vmem:[%s678_s10 + $0x88] sm:$0xff] (%p1175_p6), %v747_v55  ;;  %v759_v61 = vld [vmem:[%s1245_s28 + $0x58] sm:$0xff] (%p1175_p6) }
  0xdb   : > { %v635_v22 = vrot.slane %v634_v15, 2  ;;  %v481_v25 = vrot.slane %v480_v17, 1  ;;  %v465_v36 = vadd.f32 %v464_v24, %v377_v20  ;;  %750 = vst [vmem:[%s678_s10 + $0x90] sm:$0xff] (%p1175_p6), %v749_v56  ;;  %v767_v1 = vld [vmem:[%s1245_s28 + $0x78] sm:$0xff] (%p1175_p6) }
  0xdc   : > { %v549_v26 = vadd.f32 %v548_v18, %v547_v12  ;;  %v566_v27 = vrot.slane %v565_v19, 2  ;;  %v651_v29 = vrot.slane %v650_v23, 4  ;;  %752 = vst [vmem:[%s678_s10 + $0x98] sm:$0xff] (%p1175_p6), %v751_v57 }
  0xdd   : > { %v636_v28 = vadd.f32 %v635_v22, %v634_v15  ;;  %v482_v33 = vadd.f32 %v481_v25, %v480_v17  ;;  %754 = vst [vmem:[%s678_s10 + $0x100] sm:$0xff] (%p1175_p6), %v753_v58 }
  0xde   : > { %v550_v30 = vrot.slane %v549_v26, 1  ;;  %v567_v31 = vadd.f32 %v566_v27, %v565_v19  ;;  %v652_v35 = vadd.f32 %v651_v29, %v650_v23  ;;  %756 = vst [vmem:[%s678_s10 + $0x108] sm:$0xff] (%p1175_p6), %v755_v59 }
  0xdf   : > { %v637_v34 = vrot.slane %v636_v28, 1  ;;  %v483_v43 = vadd.f32 %v482_v33, %v395_v32  ;;  %758 = vst [vmem:[%s678_s10 + $0x110] sm:$0xff] (%p1175_p6), %v757_v60 }
  0xe0   : > { %v551_v37 = vadd.f32 %v550_v30, %v549_v26  ;;  %v568_v38 = vrot.slane %v567_v31, 1  ;;  %v653_v39 = vrot.slane %v652_v35, 2  ;;  %760 = vst [vmem:[%s678_s10 + $0x118] sm:$0xff] (%p1175_p6), %v759_v61 }
  0xe1   : > { %v638_v42 = vadd.f32 %v637_v34, %v636_v28  ;;  %762 = vst [vmem:[%s678_s10 + $0x180] sm:$0xff] (%p1175_p6), %v761_v62 }
  0xe2   : > { %v552_v40 = vadd.f32 %v551_v37, %v465_v36  ;;  %v569_v41 = vadd.f32 %v568_v38, %v567_v31  ;;  %v654_v44 = vadd.f32 %v653_v39, %v652_v35  ;;  %764 = vst [vmem:[%s678_s10 + $0x188] sm:$0xff] (%p1175_p6), %v763_v63 }
  0xe3   : > { %766 = vst [vmem:[%s678_s10 + $0x190] sm:$0xff] (%p1175_p6), %v765_v0 }
  0xe4   : > { %v639_v45 = vadd.f32 %v638_v42, %v552_v40  ;;  %v570_v46 = vadd.f32 %v569_v41, %v483_v43  ;;  %v655_v47 = vrot.slane %v654_v44, 1  ;;  %768 = vst [vmem:[%s678_s10 + $0x198] sm:$0xff] (%p1175_p6), %v767_v1 }
  0xe6   : > { %659 = vst.msk [vmem:[%s300_s29] sm:$0x1] %vm658_vm3, %v639_v45  ;;  %v656_v48 = vadd.f32 %v655_v47, %v654_v44  ;;  %675 = sbr.rel (!%p1175_p6) target bundleno = 235 (0xeb), region = 70 }
  0xe8   : > { %v657_v49 = vadd.f32 %v656_v48, %v570_v46 }
  0xea   : > { %660 = vst.msk [vmem:[%s306_s30] sm:$0x1] %vm658_vm3, %v657_v49 }
  0xeb PF: > { %s777_s14 = scalar_lea.hbm %s1397_s3, %s1157_s19  ;;  %s779_s20 = sshll.u32 %s300_s29, 4  ;;  %s780_s20 = int_to_ptr.vmem [resolvable:$true] %s779_s20 }
  0xec   : > { %s781_s22 = sshll.u32 %s777_s14, 4  ;;  %s790_s28 = scalar_lea.hbm %s1398_s4, %s1157_s19  ;;  %s782_s22 = int_to_ptr.hbm [resolvable:$true] %s781_s22 }
  0xed   : > { %s1029_s7 = sshra.s32 %s782_s22, 4  ;;  %s1035_s11 = scalar_lea.hbm %s1397_s3, 4  ;;  %s1030_s7 = int_to_ptr.hbm [resolvable:$true] %s1029_s7 }
  0xee   : > { %s1031_s8 = scalar_lea.hbm %s1030_s7, 1  ;;  %p1036_p2 = scmp.lt.s32.totalorder %s1030_s7, %s1397_s3 }
  0xef   : > { %p1032_p13 = scmp.ne.s32.totalorder %s1030_s7, %s1031_s8  ;;  %p1037_p3 = scmp.lt.s32.totalorder %s1035_s11, %s1031_s8 }
  0xf1   : > { %p1033_p0 = pnand %p1032_p13, %p1175_p6  ;;  %p1038_p4 = por %p1037_p3, %p1036_p2 }
  0xf3   : > { %p1034_p1 = pneg %p1033_p0 }
  0xf5   : > { %p1039_p5 = pnand %p1038_p4, %p1034_p1 }
  0xf7   : > { %1042 = shalt.err (!%p1039_p5)
}
  0xf8   : > { %971 = dma.vmem_to_hbm [thread:$0]  (%p1175_p6), %s780_s20, 16, %s782_s22, %s666_s5  }
  0xf9   : > { %s792_s19 = sshll.u32 %s306_s30, 4  ;;  %s794_s14 = sshll.u32 %s790_s28, 4  ;;  %s793_s19 = int_to_ptr.vmem [resolvable:$true] %s792_s19  ;;  %s795_s14 = int_to_ptr.hbm [resolvable:$true] %s794_s14 }
  0xfa   : > { %s1057_s23 = sshra.s32 %s795_s14, 4  ;;  %s1063_s9 = scalar_lea.hbm %s1398_s4, 4  ;;  %s1058_s23 = int_to_ptr.hbm [resolvable:$true] %s1057_s23 }
  0xfb   : > { %s1059_s27 = scalar_lea.hbm %s1058_s23, 1  ;;  %p1064_p11 = scmp.lt.s32.totalorder %s1058_s23, %s1398_s4 }
  0xfc   : > { %p1060_p7 = scmp.ne.s32.totalorder %s1058_s23, %s1059_s27  ;;  %p1065_p12 = scmp.lt.s32.totalorder %s1063_s9, %s1059_s27 }
  0xfe   : > { %p1061_p9 = pnand %p1060_p7, %p1175_p6  ;;  %p1066_p13 = por %p1065_p12, %p1064_p11 }
 0x100   : > { %p1062_p10 = pneg %p1061_p9 }
 0x102   : > { %p1067_p0 = pnand %p1066_p13, %p1062_p10 }
 0x104   : > { %1070 = shalt.err (!%p1067_p0)
}
 0x105   : > { %972 = dma.vmem_to_hbm [thread:$0]  (%p1175_p6), %s793_s19, 16, %s795_s14, %s670_s6  }
 0x106 PF: > { %p982_p1 = scmp.ge.s32.totalorder %s1109_s18, 2  ;;  %s813_s30 = sand.u32 1, %s1097_s15  }
 0x107   : > { %s814_s5 = scalar_lea.sflag [#allocation5], %s813_s30 }
 0x108   : > { %p976_p2 = pnand %p982_p1, %p1179_p8 }
 0x10a   : > { %p977_p3 = pneg %p976_p2 }
 0x10c   : > { %1088 = dma.done.wait (%p977_p3), %s814_s5, 16  }
 0x10d   : > { %1090 = vsyncadd (%p977_p3), %s814_s5, 4294967280  ;;  %s823_s20 = scalar_lea.sflag [#allocation7], %s813_s30 }
 0x10e   : > { %1092 = dma.done.wait (%p977_p3), %s823_s20, 16  }
 0x10f   : > { %1094 = vsyncadd (%p977_p3), %s823_s20, 4294967280  ;;  %p18_p6 = scmp.ge.s32.totalorder %s1161_s21, 6   ;;  %s1401_s15 = smov %s1101_s16 }
 0x110   : > { %s1402_s16 = smov %s1105_s17  ;;  %s1403_s17 = smov %s1173_s24 }
 0x111   : > { %s1404_s18 = smov %s1161_s21  ;;  %20 = sbr.rel (!%p18_p6) target bundleno = 5 (0x5), region = 179 }
 0x116   :  { %828 = vsyncpa [#allocation5], 1 }
 0x117   :  { %830 = vsyncpa [#allocation5 + $0x1], 1 }
 0x118   :  { %831 = vsyncpa [#allocation7], 1 }
 0x119   :  { %833 = vsyncpa [#allocation7 + $0x1], 1 }

</bundles_post_ra>
